<compile_context>
chip_gen: v6e
topology: v6e:2x2x1
jax: 0.10.0
libtpu: 0.0.40
codegen_flags: <defaults>
</compile_context>

<pallas_src>
import jax
import jax.numpy as jnp
from jax import lax
from jax.experimental import pallas as pl
from jax.experimental.pallas import tpu as pltpu


def _vmem_capacity_bytes():
    try:
        return int(pltpu.get_tpu_info().vmem_capacity_bytes)
    except Exception:
        return 64 * 1024 * 1024  # conservative (v7x per-TC VMEM)


# ----------------------------------------------------------------------------
# Single-pass VMEM-resident kernel: conv -> exact centered batch stats -> BN ->
# ReLU, all while x stays in VMEM.  Used when the whole tensor fits.
# ----------------------------------------------------------------------------
def _make_resident_kernel(n_batch, m_total, eps):
    inv_m = 1.0 / float(m_total)

    def kernel(x_ref, w_ref, b_ref, g_ref, beta_ref, o_ref, y_scr):
        c_out = w_ref.shape[0]
        # 1x1 conv per batch element on the MXU (f32 accumulation), plus the
        # per-channel column sums needed for the batch mean.
        csum = jnp.zeros((c_out, 1), jnp.float32)
        for n in range(n_batch):
            y_n = (jnp.dot(w_ref[...], x_ref[n],
                           preferred_element_type=jnp.float32) + b_ref[...])
            y_scr[n] = y_n
            csum = csum + jnp.sum(y_n, axis=1, keepdims=True)
        mean = csum * inv_m                                     # (C_out, 1)

        # Exact centered variance (no E[y^2]-E[y]^2 cancellation).
        vsum = jnp.zeros((c_out, 1), jnp.float32)
        for n in range(n_batch):
            d = y_scr[n] - mean
            vsum = vsum + jnp.sum(d * d, axis=1, keepdims=True)
        var = vsum * inv_m

        scale = g_ref[...] * lax.rsqrt(var + eps)               # (C_out, 1)
        shift = beta_ref[...] - mean * scale
        for n in range(n_batch):
            o_ref[n] = jnp.maximum(y_scr[n] * scale + shift,
                                   0.0).astype(o_ref.dtype)

    return kernel


# ----------------------------------------------------------------------------
# Pass A (streaming path): per-batch channel colsum + Gram matrix of x,
# accumulated directly into the resident output blocks.
# ----------------------------------------------------------------------------
def _stats_kernel(x_ref, gram_ref, colsum_ref):
    h = pl.program_id(1)

    @pl.when(h == 0)
    def _():
        gram_ref[0] = jnp.zeros(gram_ref.shape[1:], gram_ref.dtype)
        colsum_ref[0] = jnp.zeros(colsum_ref.shape[1:], colsum_ref.dtype)

    x = x_ref[0]                                                # (C_in, thw)
    # Gram += x @ x^T, contracting the lane axis of BOTH operands so the MXU
    # consumes a transposed operand directly (no materialized XLU transpose).
    gram_ref[0] += lax.dot_general(x, x, (((1,), (1,)), ((), ())),
                                   preferred_element_type=jnp.float32)
    colsum_ref[0] += jnp.sum(x.astype(jnp.float32), axis=1, keepdims=True)


# ----------------------------------------------------------------------------
# Pass B (streaming path): fused BN-folded 1x1 conv + ReLU, lane-dense NCHW out.
# ----------------------------------------------------------------------------
def _fused_conv_bn_relu_kernel(x_ref, w_ref, b_ref, o_ref):
    y = jnp.dot(w_ref[...], x_ref[0], preferred_element_type=jnp.float32)
    o_ref[0] = jnp.maximum(y + b_ref[...], 0.0).astype(o_ref.dtype)


def _choose_hw_tiling(HW, C_in, C_out, elt, vmem_cap, max_hw_tile=None):
    """Pick (thw, HW_pad). thw is a multiple of 128 unless it equals HW."""
    # Pass B per-lane footprint: double-buffered input + output tiles, plus the
    # (tiny, double-buffered) folded weights/bias.
    per_lane = 2 * C_in * elt + 2 * C_out * elt
    fixed = 4 * (C_out * C_in + C_out) * 4
    budget = int(0.45 * vmem_cap)
    max_thw = max(128, ((budget - fixed) // per_lane) // 128 * 128)
    if max_hw_tile is not None:
        max_thw = min(max_thw, max(128, (max_hw_tile // 128) * 128))
    if HW <= max_thw:
        return HW, HW                        # single full-extent tile, no pad
    best = 0
    if HW % 128 == 0:
        t = max_thw
        while t >= 128:
            if HW % t == 0:
                best = t
                break
            t -= 128
    if best >= min(512, max_thw):
        return best, HW
    # Awkward factorization (or HW not a multiple of 128): pad the spatial axis
    # once so we keep large, lane-dense tiles.
    t = min(max_thw, 4096)
    hw_pad = ((HW + t - 1) // t) * t
    return t, hw_pad


def gating_signal_forward(x_nchw, conv_w, conv_b, bn_gamma, bn_beta, *,
                          eps=1e-5, force_path=None, max_hw_tile=None):
    """x_nchw: (N, C_in, H, W). conv_w: (C_out, C_in, 1, 1). Returns (N, C_out, H, W)
    in the dtype of x_nchw (PyTorch training-mode BatchNorm forward semantics)."""
    N, C_in, H, W = x_nchw.shape
    C_out = conv_w.shape[0]
    HW = H * W
    M = N * HW
    x_dtype = x_nchw.dtype
    elt = jnp.dtype(x_dtype).itemsize

    vmem_cap = _vmem_capacity_bytes()
    vmem_limit = int(0.9 * vmem_cap)

    # NCHW-native: reshape only (no transpose, no dtype change, no HBM copy).
    x3 = x_nchw.reshape(N, C_in, HW)

    w2 = conv_w.reshape(C_out, C_in).astype(jnp.float32)
    b = conv_b.astype(jnp.float32).reshape(C_out)
    gamma = bn_gamma.astype(jnp.float32).reshape(C_out)
    beta = bn_beta.astype(jnp.float32).reshape(C_out)

    # MXU-native operand dtype for the big matmuls (weights are tiny).
    w_mm = w2.astype(x_dtype) if elt < 4 else w2

    # --------------- single-pass VMEM-resident fast path ---------------------
    resident_bytes = (2 * N * C_in * HW * elt        # x (double-buffered)
                      + 2 * N * C_out * HW * elt     # output (double-buffered)
                      + N * C_out * HW * 4           # f32 y scratch
                      + 8 * (C_out * C_in + 3 * C_out) * 4)
    use_resident = (resident_bytes <= int(0.45 * vmem_cap)) and (N <= 16)
    if force_path == "resident":
        use_resident = True
    elif force_path == "tiled":
        use_resident = False

    if use_resident:
        kernel = _make_resident_kernel(N, M, eps)
        out3 = pl.pallas_call(
            kernel,
            out_shape=jax.ShapeDtypeStruct((N, C_out, HW), x_dtype),
            grid_spec=pltpu.PrefetchScalarGridSpec(
                num_scalar_prefetch=0,
                grid=(1,),
                in_specs=[
                    pl.BlockSpec((N, C_in, HW), lambda i: (0, 0, 0)),
                    pl.BlockSpec((C_out, C_in), lambda i: (0, 0)),
                    pl.BlockSpec((C_out, 1), lambda i: (0, 0)),
                    pl.BlockSpec((C_out, 1), lambda i: (0, 0)),
                    pl.BlockSpec((C_out, 1), lambda i: (0, 0)),
                ],
                out_specs=pl.BlockSpec((N, C_out, HW), lambda i: (0, 0, 0)),
                scratch_shapes=[pltpu.VMEM((N, C_out, HW), jnp.float32)],
            ),
            compiler_params=pltpu.CompilerParams(
                dimension_semantics=("arbitrary",),
                vmem_limit_bytes=vmem_limit),
        )(x3, w_mm, b.reshape(C_out, 1), gamma.reshape(C_out, 1),
          beta.reshape(C_out, 1))
        return out3.reshape(N, C_out, H, W)

    # --------------- two-pass streaming path ---------------------------------
    thw, HW_pad = _choose_hw_tiling(HW, C_in, C_out, elt, vmem_cap, max_hw_tile)
    x3p = x3 if HW_pad == HW else jnp.pad(x3, ((0, 0), (0, 0), (0, HW_pad - HW)))
    n_hw = HW_pad // thw

    # Pass A: split the spatial axis across the parallel grid dimension when N
    # alone cannot feed both TensorCores (v7x megacore); harmless elsewhere.
    P = 2 if (N == 1 and n_hw % 2 == 0 and n_hw >= 2) else 1
    NG = N * P
    n_hw_in = n_hw // P
    if P == 1:
        x_map_a = lambda n, h: (n, 0, h)
        s_map = lambda n, h: (n, 0, 0)
    else:
        x_map_a = lambda g, h: (g // P, 0, (g % P) * n_hw_in + h)
        s_map = lambda g, h: (g, 0, 0)

    gram_n, colsum_n = pl.pallas_call(
        _stats_kernel,
        out_shape=(
            jax.ShapeDtypeStruct((NG, C_in, C_in), jnp.float32),
            jax.ShapeDtypeStruct((NG, C_in, 1), jnp.float32),
        ),
        grid_spec=pltpu.PrefetchScalarGridSpec(
            num_scalar_prefetch=0,
            grid=(NG, n_hw_in),
            in_specs=[pl.BlockSpec((1, C_in, thw), x_map_a)],
            out_specs=(
                pl.BlockSpec((1, C_in, C_in), s_map),
                pl.BlockSpec((1, C_in, 1), s_map),
            ),
        ),
        compiler_params=pltpu.CompilerParams(
            dimension_semantics=("parallel", "arbitrary"),
            vmem_limit_bytes=vmem_limit),
    )(x3p)

    # Tiny (C-sized) stat finalization + BN folding (plain XLA).  The zero
    # padding of x contributes nothing to colsum/Gram; M is the true count.
    gram = jnp.sum(gram_n, axis=0)                 # (C_in, C_in) = X^T X
    s = jnp.sum(colsum_n, axis=0)[:, 0]            # (C_in,)      = colsum(X)
    m = jnp.float32(M)
    ws = w2 @ s
    sum_y = ws + m * b
    # TODO(synk): E[y^2]-E[y]^2 in f32 can cancel catastrophically for very
    # large M with |mean| >> std; shift x per channel or Kahan-accumulate in
    # Pass A if that regime matters.
    sum_y2 = jnp.einsum('ok,kl,ol->o', w2, gram, w2) + 2.0 * b * ws + m * b * b
    mean = sum_y / m
    var = jnp.maximum(sum_y2 / m - mean * mean, 0.0)   # biased var; clamp >= 0
    scale = gamma * lax.rsqrt(var + eps)
    w_fold = w2 * scale[:, None]
    b_fold = ((b - mean) * scale + beta).reshape(C_out, 1)
    w_fold = w_fold.astype(x_dtype) if elt < 4 else w_fold

    out3 = pl.pallas_call(
        _fused_conv_bn_relu_kernel,
        out_shape=jax.ShapeDtypeStruct((N, C_out, HW_pad), x_dtype),
        grid_spec=pltpu.PrefetchScalarGridSpec(
            num_scalar_prefetch=0,
            grid=(N, n_hw),
            in_specs=[
                pl.BlockSpec((1, C_in, thw), lambda n, h: (n, 0, h)),
                pl.BlockSpec((C_out, C_in), lambda n, h: (0, 0)),
                pl.BlockSpec((C_out, 1), lambda n, h: (0, 0)),
            ],
            out_specs=pl.BlockSpec((1, C_out, thw), lambda n, h: (n, 0, h)),
        ),
        compiler_params=pltpu.CompilerParams(
            dimension_semantics=("parallel", "parallel"),
            vmem_limit_bytes=vmem_limit),
    )(x3p, w_fold, b_fold)

    if HW_pad != HW:
        out3 = out3[:, :, :HW]
    return out3.reshape(N, C_out, H, W)


def _reference(x_nchw, conv_w, conv_b, bn_gamma, bn_beta, eps=1e-5):
    """Pure-JAX f32 reference matching the PyTorch training-mode forward."""
    x = x_nchw.astype(jnp.float32)
    N, C_in, H, W = x.shape
    C_out = conv_w.shape[0]
    x2d = jnp.transpose(x, (0, 2, 3, 1)).reshape(-1, C_in)
    y = x2d @ conv_w.reshape(C_out, C_in).T + conv_b
    mean = jnp.mean(y, axis=0)
    var = jnp.mean((y - mean) ** 2, axis=0)
    y = (y - mean) / jnp.sqrt(var + eps) * bn_gamma + bn_beta
    y = jnp.maximum(y, 0.0)
    return jnp.transpose(y.reshape(N, H, W, C_out), (0, 3, 1, 2))


if __name__ == "__main__":
    key = jax.random.PRNGKey(0)
    k1, k2, k3 = jax.random.split(key, 3)

    def make_params(C_in, C_out):
        conv_w = 0.3 * jax.random.normal(k2, (C_out, C_in, 1, 1), jnp.float32)
        conv_b = 0.1 * jax.random.normal(k3, (C_out,), jnp.float32)
        return conv_w, conv_b, jnp.ones((C_out,), jnp.float32), jnp.zeros((C_out,), jnp.float32)

    def check(shape, C_out, *, force_path=None, max_hw_tile=None, atol=2e-4):
        N, C_in, H, W = shape
        x = jax.random.normal(k1, shape, dtype=jnp.float32)
        cw, cb, g, bb = make_params(C_in, C_out)
        out = jax.block_until_ready(
            gating_signal_forward(x, cw, cb, g, bb,
                                  force_path=force_path, max_hw_tile=max_hw_tile))
        ref = _reference(x, cw, cb, g, bb)
        assert out.shape == ref.shape
        assert out.dtype == x.dtype
        err = float(jnp.max(jnp.abs(out - ref)))
        assert err < atol, (shape, force_path, err)

    # 1) primary shape, auto-dispatch (VMEM-resident single pass)
    check((2, 4, 16, 16), 8)
    # 2) same shape through the two-pass streaming path
    check((2, 4, 16, 16), 8, force_path="tiled")
    # 3) multi-tile accumulation + N=1 spatial core-split
    check((1, 4, 32, 32), 8, force_path="tiled", max_hw_tile=128)
    # 4) awkward HW -> padded lane-dense tiles
    check((1, 4, 12, 32), 8, force_path="tiled", max_hw_tile=256)

    # 5) dtype preservation: bf16 in -> bf16 out (native-dtype streaming)
    xb = jax.random.normal(k1, (2, 4, 16, 16), jnp.float32).astype(jnp.bfloat16)
    cw, cb, g, bb = make_params(4, 8)
    outb = jax.block_until_ready(gating_signal_forward(xb, cw, cb, g, bb))
    assert outb.dtype == jnp.bfloat16
    refb = _reference(xb, cw, cb, g, bb)
    assert float(jnp.max(jnp.abs(outb.astype(jnp.float32) - refb))) < 0.15

    print("KERNEL_OK")
</pallas_src>

<mosaic_0001>
module attributes {stable_mosaic.version = 11 : i64} {
  func.func @kernel(%arg0: i32, %arg1: memref<2x4x256xf32, #tpu.memory_space<vmem>>, %arg2: memref<8x4xf32, #tpu.memory_space<vmem>>, %arg3: memref<8x1xf32, #tpu.memory_space<vmem>>, %arg4: memref<8x1xf32, #tpu.memory_space<vmem>>, %arg5: memref<8x1xf32, #tpu.memory_space<vmem>>, %arg6: memref<2x8x256xf32, #tpu.memory_space<vmem>>, %arg7: memref<2x8x256xf32, #tpu.memory_space<vmem>>) attributes {dimension_semantics = [#tpu.dimension_semantics<arbitrary>], iteration_bounds = array<i64: 1>, scalar_prefetch = 0 : i64, scratch_operands = 1 : i64, tpu.core_type = #tpu.core_type<tc>, window_params = [{pipeline_mode = #tpu.pipeline_mode<synchronous>, transform_indices = @transform_0, window_bounds = array<i64: 2, 4, 256>}, {pipeline_mode = #tpu.pipeline_mode<synchronous>, transform_indices = @transform_1, window_bounds = array<i64: 8, 4>}, {pipeline_mode = #tpu.pipeline_mode<synchronous>, transform_indices = @transform_2, window_bounds = array<i64: 8, 1>}, {pipeline_mode = #tpu.pipeline_mode<synchronous>, transform_indices = @transform_3, window_bounds = array<i64: 8, 1>}, {pipeline_mode = #tpu.pipeline_mode<synchronous>, transform_indices = @transform_4, window_bounds = array<i64: 8, 1>}, {pipeline_mode = #tpu.pipeline_mode<synchronous>, transform_indices = @transform_5, window_bounds = array<i64: 2, 8, 256>}]} {
    %cst = arith.constant 0.000000e+00 : f32
    %0 = vector.broadcast %cst : f32 to vector<8x1xf32>
    %c0 = arith.constant 0 : index
    %c0_0 = arith.constant 0 : index
    %1 = vector.load %arg2[%c0, %c0_0] : memref<8x4xf32, #tpu.memory_space<vmem>>, vector<8x4xf32>
    %c0_1 = arith.constant 0 : index
    %c0_2 = arith.constant 0 : index
    %c0_3 = arith.constant 0 : index
    %2 = vector.load %arg1[%c0_1, %c0_2, %c0_3] : memref<2x4x256xf32, #tpu.memory_space<vmem>>, vector<1x4x256xf32>
    %3 = vector.shape_cast %2 : vector<1x4x256xf32> to vector<4x256xf32>
    %cst_4 = arith.constant dense<0.000000e+00> : vector<8x256xf32>
    %4 = tpu.matmul %1, %3, %cst_4 {dimension_numbers = #tpu.dot_dimension_numbers<[1], [0], [0], [1], [0, 0, 1, 1], [], []>} : vector<8x4xf32>, vector<4x256xf32>, vector<8x256xf32> -> vector<8x256xf32>
    %c0_5 = arith.constant 0 : index
    %c0_6 = arith.constant 0 : index
    %5 = vector.load %arg3[%c0_5, %c0_6] : memref<8x1xf32, #tpu.memory_space<vmem>>, vector<8x1xf32>
    %6 = vector.broadcast %5 : vector<8x1xf32> to vector<8x256xf32>
    %7 = arith.addf %4, %6 : vector<8x256xf32>
    %c0_7 = arith.constant 0 : index
    %c0_8 = arith.constant 0 : index
    %c0_9 = arith.constant 0 : index
    %8 = vector.load %arg7[%c0_7, %c0_8, %c0_9] : memref<2x8x256xf32, #tpu.memory_space<vmem>>, vector<1x8x256xf32>
    %9 = vector.shape_cast %8 : vector<1x8x256xf32> to vector<8x256xf32>
    %10 = vector.shape_cast %7 : vector<8x256xf32> to vector<1x8x256xf32>
    tpu.vector_store %arg7[%c0_7, %c0_8, %c0_9], %10 {strides = array<i32>} : memref<2x8x256xf32, #tpu.memory_space<vmem>>, vector<1x8x256xf32>,
    %cst_10 = arith.constant dense<0.000000e+00> : vector<8xf32>
    %11 = vector.multi_reduction <add>, %7, %cst_10 [1] : vector<8x256xf32> to vector<8xf32>
    %12 = vector.shape_cast %11 : vector<8xf32> to vector<8x1xf32>
    %13 = arith.addf %0, %12 : vector<8x1xf32>
    %c0_11 = arith.constant 0 : index
    %c0_12 = arith.constant 0 : index
    %14 = vector.load %arg2[%c0_11, %c0_12] : memref<8x4xf32, #tpu.memory_space<vmem>>, vector<8x4xf32>
    %c1 = arith.constant 1 : index
    %c0_13 = arith.constant 0 : index
    %c0_14 = arith.constant 0 : index
    %15 = vector.load %arg1[%c1, %c0_13, %c0_14] : memref<2x4x256xf32, #tpu.memory_space<vmem>>, vector<1x4x256xf32>
    %16 = vector.shape_cast %15 : vector<1x4x256xf32> to vector<4x256xf32>
    %cst_15 = arith.constant dense<0.000000e+00> : vector<8x256xf32>
    %17 = tpu.matmul %14, %16, %cst_15 {dimension_numbers = #tpu.dot_dimension_numbers<[1], [0], [0], [1], [0, 0, 1, 1], [], []>} : vector<8x4xf32>, vector<4x256xf32>, vector<8x256xf32> -> vector<8x256xf32>
    %c0_16 = arith.constant 0 : index
    %c0_17 = arith.constant 0 : index
    %18 = vector.load %arg3[%c0_16, %c0_17] : memref<8x1xf32, #tpu.memory_space<vmem>>, vector<8x1xf32>
    %19 = vector.broadcast %18 : vector<8x1xf32> to vector<8x256xf32>
    %20 = arith.addf %17, %19 : vector<8x256xf32>
    %c1_18 = arith.constant 1 : index
    %c0_19 = arith.constant 0 : index
    %c0_20 = arith.constant 0 : index
    %21 = vector.load %arg7[%c1_18, %c0_19, %c0_20] : memref<2x8x256xf32, #tpu.memory_space<vmem>>, vector<1x8x256xf32>
    %22 = vector.shape_cast %21 : vector<1x8x256xf32> to vector<8x256xf32>
    %23 = vector.shape_cast %20 : vector<8x256xf32> to vector<1x8x256xf32>
    tpu.vector_store %arg7[%c1_18, %c0_19, %c0_20], %23 {strides = array<i32>} : memref<2x8x256xf32, #tpu.memory_space<vmem>>, vector<1x8x256xf32>,
    %cst_21 = arith.constant dense<0.000000e+00> : vector<8xf32>
    %24 = vector.multi_reduction <add>, %20, %cst_21 [1] : vector<8x256xf32> to vector<8xf32>
    %25 = vector.shape_cast %24 : vector<8xf32> to vector<8x1xf32>
    %26 = arith.addf %13, %25 : vector<8x1xf32>
    %cst_22 = arith.constant 0.001953125 : f32
    %27 = vector.broadcast %cst_22 : f32 to vector<8x1xf32>
    %28 = arith.mulf %26, %27 : vector<8x1xf32>
    %cst_23 = arith.constant 0.000000e+00 : f32
    %29 = vector.broadcast %cst_23 : f32 to vector<8x1xf32>
    %c0_24 = arith.constant 0 : index
    %c0_25 = arith.constant 0 : index
    %c0_26 = arith.constant 0 : index
    %30 = vector.load %arg7[%c0_24, %c0_25, %c0_26] : memref<2x8x256xf32, #tpu.memory_space<vmem>>, vector<1x8x256xf32>
    %31 = vector.shape_cast %30 : vector<1x8x256xf32> to vector<8x256xf32>
    %32 = vector.broadcast %28 : vector<8x1xf32> to vector<8x256xf32>
    %33 = arith.subf %31, %32 : vector<8x256xf32>
    %34 = arith.mulf %33, %33 : vector<8x256xf32>
    %cst_27 = arith.constant dense<0.000000e+00> : vector<8xf32>
    %35 = vector.multi_reduction <add>, %34, %cst_27 [1] : vector<8x256xf32> to vector<8xf32>
    %36 = vector.shape_cast %35 : vector<8xf32> to vector<8x1xf32>
    %37 = arith.addf %29, %36 : vector<8x1xf32>
    %c1_28 = arith.constant 1 : index
    %c0_29 = arith.constant 0 : index
    %c0_30 = arith.constant 0 : index
    %38 = vector.load %arg7[%c1_28, %c0_29, %c0_30] : memref<2x8x256xf32, #tpu.memory_space<vmem>>, vector<1x8x256xf32>
    %39 = vector.shape_cast %38 : vector<1x8x256xf32> to vector<8x256xf32>
    %40 = vector.broadcast %28 : vector<8x1xf32> to vector<8x256xf32>
    %41 = arith.subf %39, %40 : vector<8x256xf32>
    %42 = arith.mulf %41, %41 : vector<8x256xf32>
    %cst_31 = arith.constant dense<0.000000e+00> : vector<8xf32>
    %43 = vector.multi_reduction <add>, %42, %cst_31 [1] : vector<8x256xf32> to vector<8xf32>
    %44 = vector.shape_cast %43 : vector<8xf32> to vector<8x1xf32>
    %45 = arith.addf %37, %44 : vector<8x1xf32>
    %cst_32 = arith.constant 0.001953125 : f32
    %46 = vector.broadcast %cst_32 : f32 to vector<8x1xf32>
    %47 = arith.mulf %45, %46 : vector<8x1xf32>
    %c0_33 = arith.constant 0 : index
    %c0_34 = arith.constant 0 : index
    %48 = vector.load %arg4[%c0_33, %c0_34] : memref<8x1xf32, #tpu.memory_space<vmem>>, vector<8x1xf32>
    %cst_35 = arith.constant 9.99999974E-6 : f32
    %49 = vector.broadcast %cst_35 : f32 to vector<8x1xf32>
    %50 = arith.addf %47, %49 : vector<8x1xf32>
    %51 = math.rsqrt %50 : vector<8x1xf32>
    %52 = arith.mulf %48, %51 : vector<8x1xf32>
    %c0_36 = arith.constant 0 : index
    %c0_37 = arith.constant 0 : index
    %53 = vector.load %arg5[%c0_36, %c0_37] : memref<8x1xf32, #tpu.memory_space<vmem>>, vector<8x1xf32>
    %54 = arith.mulf %28, %52 : vector<8x1xf32>
    %55 = arith.subf %53, %54 : vector<8x1xf32>
    %c0_38 = arith.constant 0 : index
    %c0_39 = arith.constant 0 : index
    %c0_40 = arith.constant 0 : index
    %56 = vector.load %arg7[%c0_38, %c0_39, %c0_40] : memref<2x8x256xf32, #tpu.memory_space<vmem>>, vector<1x8x256xf32>
    %57 = vector.shape_cast %56 : vector<1x8x256xf32> to vector<8x256xf32>
    %58 = vector.broadcast %52 : vector<8x1xf32> to vector<8x256xf32>
    %59 = arith.mulf %57, %58 : vector<8x256xf32>
    %60 = vector.broadcast %55 : vector<8x1xf32> to vector<8x256xf32>
    %61 = arith.addf %59, %60 : vector<8x256xf32>
    %cst_41 = arith.constant 0.000000e+00 : f32
    %62 = vector.broadcast %cst_41 : f32 to vector<8x256xf32>
    %63 = arith.maximumf %61, %62 : vector<8x256xf32>
    %c0_42 = arith.constant 0 : index
    %c0_43 = arith.constant 0 : index
    %c0_44 = arith.constant 0 : index
    %64 = vector.load %arg6[%c0_42, %c0_43, %c0_44] : memref<2x8x256xf32, #tpu.memory_space<vmem>>, vector<1x8x256xf32>
    %65 = vector.shape_cast %64 : vector<1x8x256xf32> to vector<8x256xf32>
    %66 = vector.shape_cast %63 : vector<8x256xf32> to vector<1x8x256xf32>
    tpu.vector_store %arg6[%c0_42, %c0_43, %c0_44], %66 {strides = array<i32>} : memref<2x8x256xf32, #tpu.memory_space<vmem>>, vector<1x8x256xf32>,
    %c1_45 = arith.constant 1 : index
    %c0_46 = arith.constant 0 : index
    %c0_47 = arith.constant 0 : index
    %67 = vector.load %arg7[%c1_45, %c0_46, %c0_47] : memref<2x8x256xf32, #tpu.memory_space<vmem>>, vector<1x8x256xf32>
    %68 = vector.shape_cast %67 : vector<1x8x256xf32> to vector<8x256xf32>
    %69 = vector.broadcast %52 : vector<8x1xf32> to vector<8x256xf32>
    %70 = arith.mulf %68, %69 : vector<8x256xf32>
    %71 = vector.broadcast %55 : vector<8x1xf32> to vector<8x256xf32>
    %72 = arith.addf %70, %71 : vector<8x256xf32>
    %cst_48 = arith.constant 0.000000e+00 : f32
    %73 = vector.broadcast %cst_48 : f32 to vector<8x256xf32>
    %74 = arith.maximumf %72, %73 : vector<8x256xf32>
    %c1_49 = arith.constant 1 : index
    %c0_50 = arith.constant 0 : index
    %c0_51 = arith.constant 0 : index
    %75 = vector.load %arg6[%c1_49, %c0_50, %c0_51] : memref<2x8x256xf32, #tpu.memory_space<vmem>>, vector<1x8x256xf32>
    %76 = vector.shape_cast %75 : vector<1x8x256xf32> to vector<8x256xf32>
    %77 = vector.shape_cast %74 : vector<8x256xf32> to vector<1x8x256xf32>
    tpu.vector_store %arg6[%c1_49, %c0_50, %c0_51], %77 {strides = array<i32>} : memref<2x8x256xf32, #tpu.memory_space<vmem>>, vector<1x8x256xf32>,
    return
  }
  func.func @transform_0(%arg0: i32) -> (i32, i32, i32) {
    %c0_i32 = arith.constant 0 : i32
    %c0_i32_0 = arith.constant 0 : i32
    %c0_i32_1 = arith.constant 0 : i32
    %c0_i32_2 = arith.constant 0 : i32
    return %c0_i32, %c0_i32_0, %c0_i32_1 : i32, i32, i32
  }
  func.func @transform_1(%arg0: i32) -> (i32, i32) {
    %c0_i32 = arith.constant 0 : i32
    %c0_i32_0 = arith.constant 0 : i32
    %c0_i32_1 = arith.constant 0 : i32
    return %c0_i32, %c0_i32_0 : i32, i32
  }
  func.func @transform_2(%arg0: i32) -> (i32, i32) {
    %c0_i32 = arith.constant 0 : i32
    %c0_i32_0 = arith.constant 0 : i32
    %c0_i32_1 = arith.constant 0 : i32
    return %c0_i32, %c0_i32_0 : i32, i32
  }
  func.func @transform_3(%arg0: i32) -> (i32, i32) {
    %c0_i32 = arith.constant 0 : i32
    %c0_i32_0 = arith.constant 0 : i32
    %c0_i32_1 = arith.constant 0 : i32
    return %c0_i32, %c0_i32_0 : i32, i32
  }
  func.func @transform_4(%arg0: i32) -> (i32, i32) {
    %c0_i32 = arith.constant 0 : i32
    %c0_i32_0 = arith.constant 0 : i32
    %c0_i32_1 = arith.constant 0 : i32
    return %c0_i32, %c0_i32_0 : i32, i32
  }
  func.func @transform_5(%arg0: i32) -> (i32, i32, i32) {
    %c0_i32 = arith.constant 0 : i32
    %c0_i32_0 = arith.constant 0 : i32
    %c0_i32_1 = arith.constant 0 : i32
    %c0_i32_2 = arith.constant 0 : i32
    return %c0_i32, %c0_i32_0, %c0_i32_1 : i32, i32, i32
  }
}

</mosaic_0001>

<bundles_post_ra>
// kernel: tpu_custom_call.1
= control target key start
LH: loop header
LB: loop body
LE: loop exit
PB: predicated region body
PF: predicated region fallthrough
CT: control target
= control target key end

     0   :  { %vm35_vm0 = vcmask 1043456   ;;  %v327_v4 = vmov 0.0   ;;  %s387_s0 = inlined_call_operand.vmem [shape: f32[2,4,256], index: 0, kind: input, shape index: {}]   ;;  %s388_s1 = inlined_call_operand.vmem [shape: f32[8,4], index: 1, kind: input, shape index: {}]   ;;  %s389_s2 = inlined_call_operand.vmem [shape: f32[8,1], index: 2, kind: input, shape index: {}]   ;;  %s390_s3 = inlined_call_operand.vmem [shape: f32[8,1], index: 3, kind: input, shape index: {}]   ;;  %s391_s4 = inlined_call_operand.vmem [shape: f32[8,1], index: 4, kind: input, shape index: {}]   ;;  %s392_s5 = inlined_call_operand.hbm [shape: f32[2,8,256], index: 5, kind: output, shape index: {}]  }
   0x1   :  { %v22_v0 = vld [vmem:[%s387_s0] sm:$0xff]  ;;  %v290_v1 = vld [vmem:[%s387_s0 + $0x8] sm:$0xff]  ;;  %104 = vmatprep.mubr.f32.mxu0 %v327_v4  ;;  %199 = vmatprep.mubr.f32.mxu1 %v327_v4 }
   0x2   :  { %v30_v2 = vcombine.high %v22_v0, %v22_v0  ;;  %v127_v3 = vcombine.high %v290_v1, %v290_v1 }
   0x3   :  { %10 = vsyncpa [#allocation4], 0  ;;  %v21_v5 = vld [vmem:[%s388_s1] sm:$0xff]  ;;  %vm31_vm1 = vcmask 31744   ;;  %v328_v6 = vmov 0   ;;  %s329_s27 = smov [#allocation3]  }
   0x4   :  { %299 = vset.pattern.permute.xlu0 %v328_v6  ;;  %300 = vset.pattern.permute.xlu1 %v328_v6  ;;  %v23_v7 = vld [vmem:[%s389_s2] sm:$0xff]  ;;  %s276_s28 = sshll.u32 %s329_s27, 4  ;;  %s277_s28 = int_to_ptr.vmem [resolvable:$true] %s276_s28 }
   0x5   :  { %287 = vmatprep.subr.msk.mxu0 %vm35_vm0, %v30_v2  ;;  %291 = vmatprep.subr.msk.mxu1 %vm35_vm0, %v127_v3  ;;  %v235_v39 = vld [vmem:[%s390_s3] sm:$0xff]  ;;  %s305_s3 = scalar_lea.vmem %s277_s28, 512  ;;  %p310_p1 = scmp.lt.s32.totalorder %s277_s28, %s277_s28 }
   0x6   :  { %288 = vmatpush1.msk.msra.mxu0 %vm35_vm0, %v22_v0  ;;  %292 = vmatpush1.msk.msra.mxu1 %vm35_vm0, %v290_v1  ;;  %v239_v42 = vld [vmem:[%s391_s4] sm:$0xff]  ;;  %p306_p0 = scmp.ne.s32.totalorder %s277_s28, %s305_s3  ;;  %p311_p2 = scmp.lt.s32.totalorder %s305_s3, %s305_s3 }
   0x7   :  { %289 = vmatmul.mubr.msk.f32.vlgmr.msra.gmra.mxu0 %vm31_vm1, %v21_v5  ;;  %293 = vmatmul.mubr.msk.f32.vlgmr.msra.gmra.mxu1 %vm31_vm1, %v21_v5 }
   0x8   :  { %26 = vperm.xlu0 %299, %v23_v7   ;;  %p312_p3 = por %p311_p2, %p310_p1 }
   0xa   :  { %p313_p4 = pnand %p312_p3, %p306_p0 }
   0xc   :  { %123 = vperm.xlu0 %299, %v23_v7  }
  0x83   :  { %v27_v8 = vpop.permute.xlu0 %26 }
  0x87   :  { %v124_v11 = vpop.permute.xlu0 %123 }
  0xc7   :  { %v106_v9 = vpop.f32.mrf.mxu0  ;;  %v201_v10 = vpop.f32.mrf.mxu1 }
  0xc8   :  { %v107_v14 = vadd.f32 %v106_v9, %v27_v8  ;;  %v202_v16 = vadd.f32 %v201_v10, %v124_v11 }
  0xc9   :  { %v203_v12 = vpop.f32.mrf.mxu1  ;;  %v108_v13 = vpop.f32.mrf.mxu0 }
  0xca   :  { %v109_v15 = vadd.f32 %v108_v13, %v27_v8  ;;  %v204_v17 = vadd.f32 %v203_v12, %v124_v11 }
  0xcc   :  { %v113_v18 = vadd.f32 %v109_v15, %v107_v14  ;;  %v209_v19 = vadd.f32 %v204_v17, %v202_v16 }
  0xce   :  { %114 = vadd.xlane.f32.xlu1 %v113_v18 }
  0xd2   :  { %210 = vadd.xlane.f32.xlu1 %v209_v19 }
 0x157   :  { %v115_v20 = vpop.xlane.xlu1 %114 }
 0x15b   :  { %v211_v21 = vpop.xlane.xlu1 %210 }
 0x15c   :  { %v212_v22 = vadd.f32 %v211_v21, %v115_v20 }
 0x15e   :  { %v213_v23 = vmul.f32 0.001953125, %v212_v22 }
 0x160   :  { %v226_v24 = vsub.f32 %v202_v16, %v213_v23  ;;  %v227_v25 = vsub.f32 %v204_v17, %v213_v23  ;;  %v216_v26 = vsub.f32 %v107_v14, %v213_v23  ;;  %v217_v27 = vsub.f32 %v109_v15, %v213_v23 }
 0x162   :  { %v228_v28 = vmul.f32 %v226_v24, %v226_v24  ;;  %v229_v29 = vmul.f32 %v227_v25, %v227_v25  ;;  %v218_v30 = vmul.f32 %v216_v26, %v216_v26  ;;  %v219_v31 = vmul.f32 %v217_v27, %v217_v27 }
 0x164   :  { %v230_v32 = vadd.f32 %v229_v29, %v228_v28  ;;  %v220_v33 = vadd.f32 %v219_v31, %v218_v30 }
 0x166   :  { %231 = vadd.xlane.f32.xlu1 %v230_v32  ;;  %221 = vadd.xlane.f32.xlu0 %v220_v33 }
 0x1ef   :  { %v232_v34 = vpop.xlane.xlu1 %231  ;;  %v222_v35 = vpop.xlane.xlu0 %221 }
 0x1f0   :  { %v233_v36 = vadd.f32 %v232_v34, %v222_v35 }
 0x1f2   :  { %v234_v37 = vmul.f32 0.001953125, %v233_v36 }
 0x1f4   :  { %v236_v38 = vadd.f32 1e-05, %v234_v37 }
 0x1f6   :  { %303 = vrsqrt.f32 %v236_v38 }
 0x203   :  { %v304_v40 = vpop.eup %303 }
 0x204   :  { %v238_v41 = vmul.f32 %v304_v40, %v235_v39 }
 0x206   :  { %244 = vperm.xlu1 %300, %v238_v41   ;;  %v240_v43 = vmul.f32 %v238_v41, %v213_v23 }
 0x208   :  { %v241_v44 = vsub.f32 %v239_v42, %v240_v43 }
 0x20a   :  { %251 = vperm.xlu1 %300, %v241_v44  }
 0x281   :  { %v245_v45 = vpop.permute.xlu1 %244 }
 0x282   :  { %v247_v46 = vmul.f32 %v245_v45, %v107_v14  ;;  %v248_v47 = vmul.f32 %v245_v45, %v109_v15  ;;  %v262_v48 = vmul.f32 %v245_v45, %v202_v16  ;;  %v263_v49 = vmul.f32 %v245_v45, %v204_v17 }
 0x285   :  { %v252_v50 = vpop.permute.xlu1 %251 }
 0x286   :  { %v254_v51 = vadd.f32 %v252_v50, %v247_v46  ;;  %v255_v52 = vadd.f32 %v252_v50, %v248_v47  ;;  %v264_v53 = vadd.f32 %v262_v48, %v252_v50  ;;  %v265_v54 = vadd.f32 %v263_v49, %v252_v50 }
 0x288   :  { %v256_v55 = vmax.f32 %v254_v51, 0.0  ;;  %v257_v56 = vmax.f32 %v255_v52, 0.0  ;;  %v266_v57 = vmax.f32 %v264_v53, 0.0  ;;  %v267_v58 = vmax.f32 %v265_v54, 0.0 }
 0x28a   :  { %258 = vst [vmem:[#allocation3] sm:$0xff] %v256_v55  ;;  %259 = vst [vmem:[#allocation3 + $0x8] sm:$0xff] %v257_v56 }
 0x28b   :  { %269 = vst [vmem:[#allocation3 + $0x10] sm:$0xff] %v266_v57  ;;  %270 = vst [vmem:[#allocation3 + $0x18] sm:$0xff] %v267_v58 }
 0x28c   :  { %316 = shalt.err (!%p313_p4)
}
 0x28d   :  { %s330_s4 = smov 256   ;;  %s331_s29 = smov 16  }
 0x28e   :  { %282 = dma.vmem_to_hbm [thread:$0]  %s277_s28, 512, %s392_s5, [#allocation4], %s330_s4, %s330_s4, %s331_s29  }
 0x28f   :  { %325 = dma.done.wait [#allocation4], 512  }
 0x290   :  { %326 = vsyncadd [#allocation4], 4294966784 }
 0x291   :  { %286 = vsyncpa [#allocation4], 1 }

</bundles_post_ra>
